<compile_context>
chip_gen: v6e
topology: v6e:2x2x1
jax: 0.10.0
libtpu: 0.0.40
codegen_flags: <defaults>
</compile_context>

<pallas_src>
import functools
import numpy as np
import jax
import jax.numpy as jnp
from jax import lax
from jax.experimental import pallas as pl
from jax.experimental.pallas import tpu as pltpu

FOCAL_ALPHA = 0.25   # args.focal_alpha; gamma = 2 is hard-coded (as in loss_labels)
LANES = 128
NEG_PAD = -1.0e4     # padding logit -> contributes exactly 0 to the focal sum


def _round_up(x, m):
    return ((x + m - 1) // m) * m


def _criterion_kernel(idx_ref, norms_ref, logits_ref, gsrc_hbm, tgt_ref, out_ref,
                      acc_ref, gbuf_ref, gsem, *, alpha, n_match):
    """idx_ref    SMEM (m_pad,) i32  flat matched indices (b * nobj + src), scalar prefetch
       norms_ref  SMEM (2,) f32      [class_norm, box_norm] denominators
       logits_ref VMEM (rows_blk, 128) f32/bf16 tile of the padded flattened logits
       gsrc_hbm   HBM  (K, 8) f32    rows = [cx, cy, w, h, logit, 0, 0, 0]
       tgt_ref    VMEM (m_pad, 4) f32 matched target boxes (cxcywh, zero padded)
       out_ref    SMEM (3,) f32      [loss_ce, loss_bbox, loss_giou]
       acc_ref    VMEM (rows_blk, 128) f32 dense focal accumulator (scratch)
       gbuf_ref   VMEM (m_pad, 8) f32 gathered matched rows (scratch)
       gsem       DMA semaphore (1,)"""
    t = pl.program_id(0)
    n_t = pl.num_programs(0)

    # ---- step 0: zero the dense accumulator and start the matched-row gather ----
    @pl.when(t == 0)
    def _init():
        acc_ref[...] = jnp.zeros_like(acc_ref)

        def _issue(m, carry):
            row = idx_ref[m]
            pltpu.make_async_copy(gsrc_hbm.at[pl.ds(row, 1)],
                                  gbuf_ref.at[pl.ds(m, 1)],
                                  gsem.at[0]).start()
            return carry
        lax.fori_loop(0, n_match, _issue, 0)

    # ---- dense pass: negative-branch sigmoid focal loss on this logits tile ----
    x = logits_ref[...].astype(jnp.float32)
    ax = jnp.abs(x)
    e = jnp.exp(-ax)                          # exp(-|x|): computed once, reused
    inv = 1.0 / (1.0 + e)
    p = jnp.where(x >= 0.0, inv, e * inv)     # sigmoid(x), numerically stable
    sp = jnp.maximum(x, 0.0) + jnp.log1p(e)   # softplus(x) == BCE(x, target=0)
    acc_ref[...] += (1.0 - alpha) * sp * p * p

    # ---- last step: matched corrections + box losses, write outputs ----
    @pl.when(t == n_t - 1)
    def _final():
        def _drain(m, carry):
            # stand-in descriptor (same transfer size as every issued copy)
            pltpu.make_async_copy(gsrc_hbm.at[pl.ds(0, 1)],
                                  gbuf_ref.at[pl.ds(0, 1)],
                                  gsem.at[0]).wait()
            return carry
        lax.fori_loop(0, n_match, _drain, 0)

        g = gbuf_ref[...]                                         # (m_pad, 8)
        m_iota = lax.broadcasted_iota(jnp.int32, (g.shape[0], 1), 0)
        mask = m_iota < n_match                                   # padded rows -> 0

        # focal-loss correction for matched queries: add (positive - negative)
        ml = g[:, 4:5]
        axm = jnp.abs(ml)
        em = jnp.exp(-axm)
        invm = 1.0 / (1.0 + em)
        pm = jnp.where(ml >= 0.0, invm, em * invm)                # sigmoid(logit)
        l1pe = jnp.log1p(em)
        l_pos = alpha * (jnp.maximum(-ml, 0.0) + l1pe) * (1.0 - pm) * (1.0 - pm)
        l_neg = (1.0 - alpha) * (jnp.maximum(ml, 0.0) + l1pe) * pm * pm
        corr = jnp.where(mask, l_pos - l_neg, 0.0)
        ce_sum = jnp.sum(acc_ref[...]) + jnp.sum(corr)
        out_ref[0] = ce_sum / norms_ref[0]

        # L1 regression loss on matched boxes
        src = g[:, 0:4]                                           # (m_pad, 4) cxcywh
        tgt = tgt_ref[...]
        l1 = jnp.where(mask, jnp.sum(jnp.abs(src - tgt), axis=1, keepdims=True), 0.0)
        out_ref[1] = jnp.sum(l1) / norms_ref[1]

        # GIoU loss: diag(generalized_box_iou(xyxy(src), xyxy(tgt)))
        def _xyxy(b):
            cx, cy, w, h = b[:, 0:1], b[:, 1:2], b[:, 2:3], b[:, 3:4]
            return cx - 0.5 * w, cy - 0.5 * h, cx + 0.5 * w, cy + 0.5 * h

        sx0, sy0, sx1, sy1 = _xyxy(src)
        tx0, ty0, tx1, ty1 = _xyxy(tgt)
        area_s = (sx1 - sx0) * (sy1 - sy0)
        area_t = (tx1 - tx0) * (ty1 - ty0)
        iw = jnp.maximum(jnp.minimum(sx1, tx1) - jnp.maximum(sx0, tx0), 0.0)
        ih = jnp.maximum(jnp.minimum(sy1, ty1) - jnp.maximum(sy0, ty0), 0.0)
        inter = iw * ih
        union = area_s + area_t - inter
        iou = inter / union
        ew = jnp.maximum(jnp.maximum(sx1, tx1) - jnp.minimum(sx0, tx0), 0.0)
        eh = jnp.maximum(jnp.maximum(sy1, ty1) - jnp.minimum(sy0, ty0), 0.0)
        enclose = ew * eh
        giou = iou - (enclose - union) / enclose
        out_ref[2] = jnp.sum(jnp.where(mask, 1.0 - giou, 0.0)) / norms_ref[1]


def unified_single_class_criterion(pred_logits, pred_boxes, batch_idx, src_idx,
                                   tgt_boxes, num_boxes, *,
                                   focal_alpha=FOCAL_ALPHA,
                                   class_normalization="num_box",
                                   box_normalization="num_box",
                                   max_block_rows=512):
    """Equivalent of UnifiedSingleClassCriterion.forward(outputs, targets,
    losses=['labels','boxes'], num_boxes, indices=<given>)."""
    bs, nobj = pred_logits.shape
    K = bs * nobj
    M = int(tgt_boxes.shape[0])

    # normalization denominators (traced-friendly: no float() on traced values)
    def _norm(mode):
        if mode == "num_box":
            return jnp.asarray(num_boxes, jnp.float32)
        if mode == "mean":
            return jnp.asarray(nobj, jnp.float32)
        return jnp.asarray(1.0, jnp.float32)
    norms = jnp.stack([_norm(class_normalization), _norm(box_normalization)])

    # --- sublane/lane-dense logits layout: (r_pad, 128), padded with NEG_PAD ---
    nrows = -(-K // LANES)
    rows_per_block = min(max_block_rows, _round_up(nrows, 8))
    r_pad = _round_up(nrows, rows_per_block)
    pad = r_pad * LANES - K
    logits2d = jnp.pad(pred_logits.reshape(K), (0, pad),
                       constant_values=NEG_PAD).reshape(r_pad, LANES)

    # --- HBM gather source rows: [cx, cy, w, h, logit, 0, 0, 0] per query ---
    gsrc = jnp.concatenate(
        [pred_boxes.reshape(K, 4).astype(jnp.float32),
         pred_logits.reshape(K, 1).astype(jnp.float32),
         jnp.zeros((K, 3), jnp.float32)], axis=1)

    # --- matched flat indices (SMEM scalar prefetch) and padded matched targets ---
    m_pad = _round_up(max(M, 1), 8)
    flat_idx = (batch_idx.astype(jnp.int32) * nobj + src_idx.astype(jnp.int32)).reshape(M)
    flat_idx = jnp.pad(flat_idx, (0, m_pad - M))
    tgt_pad = jnp.pad(tgt_boxes.astype(jnp.float32), ((0, m_pad - M), (0, 0)))

    grid = (r_pad // rows_per_block,)
    kernel = functools.partial(_criterion_kernel, alpha=float(focal_alpha), n_match=M)

    out = pl.pallas_call(
        kernel,
        out_shape=jax.ShapeDtypeStruct((3,), jnp.float32),
        grid_spec=pltpu.PrefetchScalarGridSpec(
            num_scalar_prefetch=1,
            grid=grid,
            in_specs=[
                pl.BlockSpec(memory_space=pltpu.MemorySpace.SMEM),             # norms
                pl.BlockSpec((rows_per_block, LANES), lambda t, idx: (t, 0)),  # logits tiles
                pl.BlockSpec(memory_space=pl.ANY),                             # gather src (HBM)
                pl.BlockSpec((m_pad, 4), lambda t, idx: (0, 0)),               # matched targets
            ],
            out_specs=pl.BlockSpec(memory_space=pltpu.MemorySpace.SMEM),
            scratch_shapes=[
                pltpu.VMEM((rows_per_block, LANES), jnp.float32),   # focal accumulator
                pltpu.VMEM((m_pad, 8), jnp.float32),                # gathered matched rows
                pltpu.SemaphoreType.DMA((1,)),                      # gather semaphore
            ],
        ),
        compiler_params=pltpu.CompilerParams(
            dimension_semantics=("arbitrary",),
        ),
    )(flat_idx, norms, logits2d, gsrc, tgt_pad)

    return {"loss_ce": out[0], "loss_bbox": out[1], "loss_giou": out[2]}


def reference_losses(pred_logits, pred_boxes, batch_idx, src_idx, tgt_boxes, num_boxes,
                     alpha=FOCAL_ALPHA, class_normalization="num_box",
                     box_normalization="num_box"):
    """Pure-JAX reference mirroring the PyTorch module semantics."""
    bs, nobj = pred_logits.shape
    norm = {"num_box": float(num_boxes), "mean": float(nobj), "none": 1.0}

    onehot = jnp.zeros((bs, nobj), jnp.float32).at[batch_idx, src_idx].set(1.0)
    x = pred_logits.astype(jnp.float32)
    p = jax.nn.sigmoid(x)
    ce = jnp.maximum(x, 0.0) - x * onehot + jnp.log1p(jnp.exp(-jnp.abs(x)))
    p_t = p * onehot + (1 - p) * (1 - onehot)
    loss = (alpha * onehot + (1 - alpha) * (1 - onehot)) * ce * (1 - p_t) ** 2
    loss_ce = loss.sum() / norm[class_normalization]

    src = pred_boxes[batch_idx, src_idx].astype(jnp.float32)
    tgt = tgt_boxes.astype(jnp.float32)
    loss_bbox = jnp.abs(src - tgt).sum() / norm[box_normalization]

    def xyxy(b):
        cx, cy, w, h = jnp.split(b, 4, axis=-1)
        return jnp.concatenate([cx - 0.5 * w, cy - 0.5 * h, cx + 0.5 * w, cy + 0.5 * h], -1)

    sb, tb = xyxy(src), xyxy(tgt)
    area_s = (sb[:, 2] - sb[:, 0]) * (sb[:, 3] - sb[:, 1])
    area_t = (tb[:, 2] - tb[:, 0]) * (tb[:, 3] - tb[:, 1])
    wh = jnp.clip(jnp.minimum(sb[:, 2:], tb[:, 2:]) - jnp.maximum(sb[:, :2], tb[:, :2]), 0.0)
    inter = wh[:, 0] * wh[:, 1]
    union = area_s + area_t - inter
    iou = inter / union
    wh_e = jnp.clip(jnp.maximum(sb[:, 2:], tb[:, 2:]) - jnp.minimum(sb[:, :2], tb[:, :2]), 0.0)
    enc = wh_e[:, 0] * wh_e[:, 1]
    giou = iou - (enc - union) / enc
    loss_giou = (1.0 - giou).sum() / norm[box_normalization]
    return {"loss_ce": loss_ce, "loss_bbox": loss_bbox, "loss_giou": loss_giou}


if __name__ == "__main__":
    key = jax.random.PRNGKey(0)
    k1, k2, k3, k4 = jax.random.split(key, 4)

    bs, nobj = 2, 8                         # pred_logits: (bs, nobj) -- single class
    pred_logits = jax.random.normal(k1, (bs, nobj), jnp.float32)
    pred_boxes = jax.nn.sigmoid(jax.random.normal(k2, (bs, nobj, 4), jnp.float32))

    # Synthetic targets + precomputed Hungarian indices (matcher not run here).
    gt_boxes_b0 = jax.nn.sigmoid(jax.random.normal(k3, (3, 4), jnp.float32))
    gt_boxes_b1 = jax.nn.sigmoid(jax.random.normal(k4, (2, 4), jnp.float32))
    indices = [(jnp.array([1, 4, 6]), jnp.array([0, 1, 2])),   # batch 0: (src, tgt)
               (jnp.array([2, 5]), jnp.array([1, 0]))]         # batch 1: (src, tgt)

    # _get_src_permutation_idx + concatenated matched target boxes
    batch_idx = jnp.concatenate([jnp.full_like(s, i) for i, (s, _) in enumerate(indices)])
    src_idx = jnp.concatenate([s for s, _ in indices])
    tgt_boxes = jnp.concatenate([gt_boxes_b0[indices[0][1]], gt_boxes_b1[indices[1][1]]], axis=0)
    num_boxes = float(tgt_boxes.shape[0])   # total number of GT boxes

    losses = unified_single_class_criterion(pred_logits, pred_boxes, batch_idx, src_idx,
                                            tgt_boxes, num_boxes)
    jax.block_until_ready(losses)

    ref = reference_losses(pred_logits, pred_boxes, batch_idx, src_idx, tgt_boxes, num_boxes)
    for k in ("loss_ce", "loss_bbox", "loss_giou"):
        if not np.allclose(np.asarray(losses[k]), np.asarray(ref[k]), rtol=1e-4, atol=1e-4):
            raise AssertionError(f"{k}: kernel={losses[k]} ref={ref[k]}")

    print("KERNEL_OK")
</pallas_src>

<mosaic_0001>
module attributes {stable_mosaic.version = 11 : i64} {
  func.func @_criterion_kernel(%arg0: i32, %arg1: memref<8xi32, #tpu.memory_space<smem>>, %arg2: memref<2xf32, #tpu.memory_space<smem>>, %arg3: memref<8x128xf32, #tpu.memory_space<vmem>>, %arg4: memref<16x8xf32, #tpu.memory_space<any>>, %arg5: memref<8x4xf32, #tpu.memory_space<vmem>>, %arg6: memref<3xf32, #tpu.memory_space<smem>>, %arg7: memref<8x128xf32, #tpu.memory_space<vmem>>, %arg8: memref<8x8xf32, #tpu.memory_space<vmem>>, %arg9: memref<1x!tpu.dma_semaphore, #tpu.memory_space<semaphore_mem>>) attributes {dimension_semantics = [#tpu.dimension_semantics<arbitrary>], iteration_bounds = array<i64: 1>, scalar_prefetch = 1 : i64, scratch_operands = 3 : i64, tpu.core_type = #tpu.core_type<tc>, window_params = [{transform_indices = @transform_0, window_bounds = array<i64: 2>}, {transform_indices = @transform_1, window_bounds = array<i64: 8, 128>}, {}, {pipeline_mode = #tpu.pipeline_mode<synchronous>, transform_indices = @transform_3, window_bounds = array<i64: 8, 4>}, {transform_indices = @transform_4, window_bounds = array<i64: 3>}]} {
    %c0_i32 = arith.constant 0 : i32
    %0 = arith.cmpi eq, %arg0, %c0_i32 : i32
    %1 = arith.extui %0 : i1 to i32
    %c0_i32_0 = arith.constant 0 : i32
    %2 = arith.cmpi ne, %1, %c0_i32_0 : i32
    scf.if %2 {
      %cst_13 = arith.constant 0.000000e+00 : f32
      %30 = vector.broadcast %cst_13 : f32 to vector<8x128xf32>
      %c0_14 = arith.constant 0 : index
      %c0_15 = arith.constant 0 : index
      %31 = vector.load %arg7[%c0_14, %c0_15] : memref<8x128xf32, #tpu.memory_space<vmem>>, vector<8x128xf32>
      tpu.vector_store %arg7[%c0_14, %c0_15], %30 {strides = array<i32>} : memref<8x128xf32, #tpu.memory_space<vmem>>, vector<8x128xf32>,
      %c0_i32_16 = arith.constant 0 : i32
      %c5_i32 = arith.constant 5 : i32
      %32 = arith.addi %c0_i32_16, %c5_i32 : i32
      %c1_i32 = arith.constant 1 : i32
      scf.for %arg10 = %c0_i32_16 to %32 step %c1_i32  : i32 {
        %33 = arith.index_cast %arg10 : i32 to index
        %34 = memref.load %arg1[%33] : memref<8xi32, #tpu.memory_space<smem>>
        %c0_i32_18 = arith.constant 0 : i32
        %c0_i32_19 = arith.constant 0 : i32
        %35 = tpu.memref_slice %arg4[%34, %c0_i32_19] : memref<16x8xf32, #tpu.memory_space<any>> -> memref<1x8xf32, #tpu.memory_space<any>>
        %c0_i32_20 = arith.constant 0 : i32
        %36 = tpu.memref_slice %arg8[%arg10, %c0_i32_20] : memref<8x8xf32, #tpu.memory_space<vmem>> -> memref<1x8xf32, #tpu.memory_space<vmem>>
        %37 = tpu.memref_slice %arg9[%c0_i32_18] : memref<1x!tpu.dma_semaphore, #tpu.memory_space<semaphore_mem>> -> memref<1x!tpu.dma_semaphore, #tpu.memory_space<semaphore_mem>>
        %38 = tpu.memref_squeeze %37 : memref<1x!tpu.dma_semaphore, #tpu.memory_space<semaphore_mem>> -> memref<!tpu.dma_semaphore, #tpu.memory_space<semaphore_mem>>
        tpu.enqueue_dma source(%35 : memref<1x8xf32, #tpu.memory_space<any>>) target(%36 : memref<1x8xf32, #tpu.memory_space<vmem>>) target_semaphore(%38 : memref<!tpu.dma_semaphore, #tpu.memory_space<semaphore_mem>>)
      }
      %c5_i32_17 = arith.constant 5 : i32
    } else {
    }
    %c0 = arith.constant 0 : index
    %c0_1 = arith.constant 0 : index
    %3 = vector.load %arg3[%c0, %c0_1] : memref<8x128xf32, #tpu.memory_space<vmem>>, vector<8x128xf32>
    %4 = math.absf %3 : vector<8x128xf32>
    %cst = arith.constant 0.000000e+00 : f32
    %5 = vector.broadcast %cst : f32 to vector<8x128xf32>
    %6 = arith.subf %5, %4 : vector<8x128xf32>
    %7 = math.exp %6 : vector<8x128xf32>
    %cst_2 = arith.constant 1.000000e+00 : f32
    %8 = vector.broadcast %cst_2 : f32 to vector<8x128xf32>
    %9 = arith.addf %8, %7 : vector<8x128xf32>
    %cst_3 = arith.constant 1.000000e+00 : f32
    %10 = vector.broadcast %cst_3 : f32 to vector<8x128xf32>
    %11 = arith.divf %10, %9 : vector<8x128xf32>
    %cst_4 = arith.constant 0.000000e+00 : f32
    %12 = vector.broadcast %cst_4 : f32 to vector<8x128xf32>
    %13 = arith.cmpf oge, %3, %12 : vector<8x128xf32>
    %14 = arith.mulf %7, %11 : vector<8x128xf32>
    %15 = arith.select %13, %11, %14 : vector<8x128xi1>, vector<8x128xf32>
    %cst_5 = arith.constant 0.000000e+00 : f32
    %16 = vector.broadcast %cst_5 : f32 to vector<8x128xf32>
    %17 = arith.maximumf %3, %16 : vector<8x128xf32>
    %18 = math.log1p %7 : vector<8x128xf32>
    %19 = arith.addf %17, %18 : vector<8x128xf32>
    %c0_6 = arith.constant 0 : index
    %c0_7 = arith.constant 0 : index
    %20 = vector.load %arg7[%c0_6, %c0_7] : memref<8x128xf32, #tpu.memory_space<vmem>>, vector<8x128xf32>
    %cst_8 = arith.constant 7.500000e-01 : f32
    %21 = vector.broadcast %cst_8 : f32 to vector<8x128xf32>
    %22 = arith.mulf %21, %19 : vector<8x128xf32>
    %23 = arith.mulf %22, %15 : vector<8x128xf32>
    %24 = arith.mulf %23, %15 : vector<8x128xf32>
    %25 = arith.addf %20, %24 : vector<8x128xf32>
    %c0_9 = arith.constant 0 : index
    %c0_10 = arith.constant 0 : index
    %26 = vector.load %arg7[%c0_9, %c0_10] : memref<8x128xf32, #tpu.memory_space<vmem>>, vector<8x128xf32>
    tpu.vector_store %arg7[%c0_9, %c0_10], %25 {strides = array<i32>} : memref<8x128xf32, #tpu.memory_space<vmem>>, vector<8x128xf32>,
    %c0_i32_11 = arith.constant 0 : i32
    %27 = arith.cmpi eq, %arg0, %c0_i32_11 : i32
    %28 = arith.extui %27 : i1 to i32
    %c0_i32_12 = arith.constant 0 : i32
    %29 = arith.cmpi ne, %28, %c0_i32_12 : i32
    scf.if %29 {
      %c0_i32_13 = arith.constant 0 : i32
      %c5_i32 = arith.constant 5 : i32
      %30 = arith.addi %c0_i32_13, %c5_i32 : i32
      %c1_i32 = arith.constant 1 : i32
      scf.for %arg10 = %c0_i32_13 to %30 step %c1_i32  : i32 {
        %c0_i32_57 = arith.constant 0 : i32
        %c0_i32_58 = arith.constant 0 : i32
        %c0_i32_59 = arith.constant 0 : i32
        %177 = tpu.memref_slice %arg4[%c0_i32_58, %c0_i32_59] : memref<16x8xf32, #tpu.memory_space<any>> -> memref<1x8xf32, #tpu.memory_space<any>>
        %c0_i32_60 = arith.constant 0 : i32
        %c0_i32_61 = arith.constant 0 : i32
        %178 = tpu.memref_slice %arg8[%c0_i32_60, %c0_i32_61] : memref<8x8xf32, #tpu.memory_space<vmem>> -> memref<1x8xf32, #tpu.memory_space<vmem>>
        %179 = tpu.memref_slice %arg9[%c0_i32_57] : memref<1x!tpu.dma_semaphore, #tpu.memory_space<semaphore_mem>> -> memref<1x!tpu.dma_semaphore, #tpu.memory_space<semaphore_mem>>
        %180 = tpu.memref_squeeze %179 : memref<1x!tpu.dma_semaphore, #tpu.memory_space<semaphore_mem>> -> memref<!tpu.dma_semaphore, #tpu.memory_space<semaphore_mem>>
        tpu.wait_dma2 semaphore(%180 : memref<!tpu.dma_semaphore, #tpu.memory_space<semaphore_mem>>) src(%177 : memref<1x8xf32, #tpu.memory_space<any>>) dst(%178 : memref<1x8xf32, #tpu.memory_space<vmem>>)
      }
      %c0_14 = arith.constant 0 : index
      %c0_15 = arith.constant 0 : index
      %31 = vector.load %arg8[%c0_14, %c0_15] : memref<8x8xf32, #tpu.memory_space<vmem>>, vector<8x8xf32>
      %32 = tpu.iota {dimensions = array<i32: 0>} : vector<8x1xi32>
      %c5_i32_16 = arith.constant 5 : i32
      %33 = vector.broadcast %c5_i32_16 : i32 to vector<8x1xi32>
      %34 = arith.cmpi slt, %32, %33 : vector<8x1xi32>
      %35 = vector.extract_strided_slice %31 {offsets = [0, 4], sizes = [8, 1], strides = [1, 1]} : vector<8x8xf32> to vector<8x1xf32>
      %36 = math.absf %35 : vector<8x1xf32>
      %cst_17 = arith.constant 0.000000e+00 : f32
      %37 = vector.broadcast %cst_17 : f32 to vector<8x1xf32>
      %38 = arith.subf %37, %36 : vector<8x1xf32>
      %39 = math.exp %38 : vector<8x1xf32>
      %cst_18 = arith.constant 1.000000e+00 : f32
      %40 = vector.broadcast %cst_18 : f32 to vector<8x1xf32>
      %41 = arith.addf %40, %39 : vector<8x1xf32>
      %cst_19 = arith.constant 1.000000e+00 : f32
      %42 = vector.broadcast %cst_19 : f32 to vector<8x1xf32>
      %43 = arith.divf %42, %41 : vector<8x1xf32>
      %cst_20 = arith.constant 0.000000e+00 : f32
      %44 = vector.broadcast %cst_20 : f32 to vector<8x1xf32>
      %45 = arith.cmpf oge, %35, %44 : vector<8x1xf32>
      %46 = arith.mulf %39, %43 : vector<8x1xf32>
      %47 = arith.select %45, %43, %46 : vector<8x1xi1>, vector<8x1xf32>
      %48 = math.log1p %39 : vector<8x1xf32>
      %cst_21 = arith.constant 0.000000e+00 : f32
      %49 = vector.broadcast %cst_21 : f32 to vector<8x1xf32>
      %50 = arith.subf %49, %35 : vector<8x1xf32>
      %cst_22 = arith.constant 0.000000e+00 : f32
      %51 = vector.broadcast %cst_22 : f32 to vector<8x1xf32>
      %52 = arith.maximumf %50, %51 : vector<8x1xf32>
      %53 = arith.addf %52, %48 : vector<8x1xf32>
      %cst_23 = arith.constant 2.500000e-01 : f32
      %54 = vector.broadcast %cst_23 : f32 to vector<8x1xf32>
      %55 = arith.mulf %54, %53 : vector<8x1xf32>
      %cst_24 = arith.constant 1.000000e+00 : f32
      %56 = vector.broadcast %cst_24 : f32 to vector<8x1xf32>
      %57 = arith.subf %56, %47 : vector<8x1xf32>
      %58 = arith.mulf %55, %57 : vector<8x1xf32>
      %cst_25 = arith.constant 1.000000e+00 : f32
      %59 = vector.broadcast %cst_25 : f32 to vector<8x1xf32>
      %60 = arith.subf %59, %47 : vector<8x1xf32>
      %61 = arith.mulf %58, %60 : vector<8x1xf32>
      %cst_26 = arith.constant 0.000000e+00 : f32
      %62 = vector.broadcast %cst_26 : f32 to vector<8x1xf32>
      %63 = arith.maximumf %35, %62 : vector<8x1xf32>
      %64 = arith.addf %63, %48 : vector<8x1xf32>
      %cst_27 = arith.constant 7.500000e-01 : f32
      %65 = vector.broadcast %cst_27 : f32 to vector<8x1xf32>
      %66 = arith.mulf %65, %64 : vector<8x1xf32>
      %67 = arith.mulf %66, %47 : vector<8x1xf32>
      %68 = arith.mulf %67, %47 : vector<8x1xf32>
      %69 = arith.subf %61, %68 : vector<8x1xf32>
      %cst_28 = arith.constant 0.000000e+00 : f32
      %70 = vector.broadcast %cst_28 : f32 to vector<8x1xf32>
      %71 = arith.select %34, %69, %70 : vector<8x1xi1>, vector<8x1xf32>
      %c0_29 = arith.constant 0 : index
      %c0_30 = arith.constant 0 : index
      %72 = vector.load %arg7[%c0_29, %c0_30] : memref<8x128xf32, #tpu.memory_space<vmem>>, vector<8x128xf32>
      %73 = vector.shape_cast %72 : vector<8x128xf32> to vector<1x8x128xf32>
      %cst_31 = arith.constant dense<0.000000e+00> : vector<1xf32>
      %74 = vector.multi_reduction <add>, %73, %cst_31 [1, 2] : vector<1x8x128xf32> to vector<1xf32>
      %75 = vector.shape_cast %74 : vector<1xf32> to vector<1x1x1xf32>
      %76 = vector.extract %75[0, 0, 0] : f32 from vector<1x1x1xf32>
      %77 = vector.shape_cast %71 : vector<8x1xf32> to vector<1x8x1xf32>
      %cst_32 = arith.constant dense<0.000000e+00> : vector<1xf32>
      %78 = vector.multi_reduction <add>, %77, %cst_32 [1, 2] : vector<1x8x1xf32> to vector<1xf32>
      %79 = vector.shape_cast %78 : vector<1xf32> to vector<1x1x1xf32>
      %80 = vector.extract %79[0, 0, 0] : f32 from vector<1x1x1xf32>
      %81 = arith.addf %76, %80 : f32
      %c0_33 = arith.constant 0 : index
      %82 = memref.load %arg2[%c0_33] : memref<2xf32, #tpu.memory_space<smem>>
      %83 = arith.divf %81, %82 : f32
      %c0_34 = arith.constant 0 : index
      %84 = memref.load %arg6[%c0_34] : memref<3xf32, #tpu.memory_space<smem>>
      memref.store %83, %arg6[%c0_34] : memref<3xf32, #tpu.memory_space<smem>>
      %85 = vector.extract_strided_slice %31 {offsets = [0, 0], sizes = [8, 4], strides = [1, 1]} : vector<8x8xf32> to vector<8x4xf32>
      %c0_35 = arith.constant 0 : index
      %c0_36 = arith.constant 0 : index
      %86 = vector.load %arg5[%c0_35, %c0_36] : memref<8x4xf32, #tpu.memory_space<vmem>>, vector<8x4xf32>
      %87 = arith.subf %85, %86 : vector<8x4xf32>
      %88 = math.absf %87 : vector<8x4xf32>
      %cst_37 = arith.constant dense<0.000000e+00> : vector<8xf32>
      %89 = vector.multi_reduction <add>, %88, %cst_37 [1] : vector<8x4xf32> to vector<8xf32>
      %90 = vector.shape_cast %89 : vector<8xf32> to vector<8x1xf32>
      %cst_38 = arith.constant 0.000000e+00 : f32
      %91 = vector.broadcast %cst_38 : f32 to vector<8x1xf32>
      %92 = arith.select %34, %90, %91 : vector<8x1xi1>, vector<8x1xf32>
      %93 = vector.shape_cast %92 : vector<8x1xf32> to vector<1x8x1xf32>
      %cst_39 = arith.constant dense<0.000000e+00> : vector<1xf32>
      %94 = vector.multi_reduction <add>, %93, %cst_39 [1, 2] : vector<1x8x1xf32> to vector<1xf32>
      %95 = vector.shape_cast %94 : vector<1xf32> to vector<1x1x1xf32>
      %96 = vector.extract %95[0, 0, 0] : f32 from vector<1x1x1xf32>
      %c1 = arith.constant 1 : index
      %97 = memref.load %arg2[%c1] : memref<2xf32, #tpu.memory_space<smem>>
      %98 = arith.divf %96, %97 : f32
      %c1_40 = arith.constant 1 : index
      %99 = memref.load %arg6[%c1_40] : memref<3xf32, #tpu.memory_space<smem>>
      memref.store %98, %arg6[%c1_40] : memref<3xf32, #tpu.memory_space<smem>>
      %100 = vector.extract_strided_slice %85 {offsets = [0, 0], sizes = [8, 1], strides = [1, 1]} : vector<8x4xf32> to vector<8x1xf32>
      %101 = vector.extract_strided_slice %85 {offsets = [0, 1], sizes = [8, 1], strides = [1, 1]} : vector<8x4xf32> to vector<8x1xf32>
      %102 = vector.extract_strided_slice %85 {offsets = [0, 2], sizes = [8, 1], strides = [1, 1]} : vector<8x4xf32> to vector<8x1xf32>
      %103 = vector.extract_strided_slice %85 {offsets = [0, 3], sizes = [8, 1], strides = [1, 1]} : vector<8x4xf32> to vector<8x1xf32>
      %cst_41 = arith.constant 5.000000e-01 : f32
      %104 = vector.broadcast %cst_41 : f32 to vector<8x1xf32>
      %105 = arith.mulf %104, %102 : vector<8x1xf32>
      %106 = arith.subf %100, %105 : vector<8x1xf32>
      %cst_42 = arith.constant 5.000000e-01 : f32
      %107 = vector.broadcast %cst_42 : f32 to vector<8x1xf32>
      %108 = arith.mulf %107, %103 : vector<8x1xf32>
      %109 = arith.subf %101, %108 : vector<8x1xf32>
      %cst_43 = arith.constant 5.000000e-01 : f32
      %110 = vector.broadcast %cst_43 : f32 to vector<8x1xf32>
      %111 = arith.mulf %110, %102 : vector<8x1xf32>
      %112 = arith.addf %100, %111 : vector<8x1xf32>
      %cst_44 = arith.constant 5.000000e-01 : f32
      %113 = vector.broadcast %cst_44 : f32 to vector<8x1xf32>
      %114 = arith.mulf %113, %103 : vector<8x1xf32>
      %115 = arith.addf %101, %114 : vector<8x1xf32>
      %116 = vector.extract_strided_slice %86 {offsets = [0, 0], sizes = [8, 1], strides = [1, 1]} : vector<8x4xf32> to vector<8x1xf32>
      %117 = vector.extract_strided_slice %86 {offsets = [0, 1], sizes = [8, 1], strides = [1, 1]} : vector<8x4xf32> to vector<8x1xf32>
      %118 = vector.extract_strided_slice %86 {offsets = [0, 2], sizes = [8, 1], strides = [1, 1]} : vector<8x4xf32> to vector<8x1xf32>
      %119 = vector.extract_strided_slice %86 {offsets = [0, 3], sizes = [8, 1], strides = [1, 1]} : vector<8x4xf32> to vector<8x1xf32>
      %cst_45 = arith.constant 5.000000e-01 : f32
      %120 = vector.broadcast %cst_45 : f32 to vector<8x1xf32>
      %121 = arith.mulf %120, %118 : vector<8x1xf32>
      %122 = arith.subf %116, %121 : vector<8x1xf32>
      %cst_46 = arith.constant 5.000000e-01 : f32
      %123 = vector.broadcast %cst_46 : f32 to vector<8x1xf32>
      %124 = arith.mulf %123, %119 : vector<8x1xf32>
      %125 = arith.subf %117, %124 : vector<8x1xf32>
      %cst_47 = arith.constant 5.000000e-01 : f32
      %126 = vector.broadcast %cst_47 : f32 to vector<8x1xf32>
      %127 = arith.mulf %126, %118 : vector<8x1xf32>
      %128 = arith.addf %116, %127 : vector<8x1xf32>
      %cst_48 = arith.constant 5.000000e-01 : f32
      %129 = vector.broadcast %cst_48 : f32 to vector<8x1xf32>
      %130 = arith.mulf %129, %119 : vector<8x1xf32>
      %131 = arith.addf %117, %130 : vector<8x1xf32>
      %132 = arith.subf %112, %106 : vector<8x1xf32>
      %133 = arith.subf %115, %109 : vector<8x1xf32>
      %134 = arith.mulf %132, %133 : vector<8x1xf32>
      %135 = arith.subf %128, %122 : vector<8x1xf32>
      %136 = arith.subf %131, %125 : vector<8x1xf32>
      %137 = arith.mulf %135, %136 : vector<8x1xf32>
      %138 = arith.minimumf %112, %128 : vector<8x1xf32>
      %139 = arith.maximumf %106, %122 : vector<8x1xf32>
      %140 = arith.subf %138, %139 : vector<8x1xf32>
      %cst_49 = arith.constant 0.000000e+00 : f32
      %141 = vector.broadcast %cst_49 : f32 to vector<8x1xf32>
      %142 = arith.maximumf %140, %141 : vector<8x1xf32>
      %143 = arith.minimumf %115, %131 : vector<8x1xf32>
      %144 = arith.maximumf %109, %125 : vector<8x1xf32>
      %145 = arith.subf %143, %144 : vector<8x1xf32>
      %cst_50 = arith.constant 0.000000e+00 : f32
      %146 = vector.broadcast %cst_50 : f32 to vector<8x1xf32>
      %147 = arith.maximumf %145, %146 : vector<8x1xf32>
      %148 = arith.mulf %142, %147 : vector<8x1xf32>
      %149 = arith.addf %134, %137 : vector<8x1xf32>
      %150 = arith.subf %149, %148 : vector<8x1xf32>
      %151 = arith.divf %148, %150 : vector<8x1xf32>
      %152 = arith.maximumf %112, %128 : vector<8x1xf32>
      %153 = arith.minimumf %106, %122 : vector<8x1xf32>
      %154 = arith.subf %152, %153 : vector<8x1xf32>
      %cst_51 = arith.constant 0.000000e+00 : f32
      %155 = vector.broadcast %cst_51 : f32 to vector<8x1xf32>
      %156 = arith.maximumf %154, %155 : vector<8x1xf32>
      %157 = arith.maximumf %115, %131 : vector<8x1xf32>
      %158 = arith.minimumf %109, %125 : vector<8x1xf32>
      %159 = arith.subf %157, %158 : vector<8x1xf32>
      %cst_52 = arith.constant 0.000000e+00 : f32
      %160 = vector.broadcast %cst_52 : f32 to vector<8x1xf32>
      %161 = arith.maximumf %159, %160 : vector<8x1xf32>
      %162 = arith.mulf %156, %161 : vector<8x1xf32>
      %163 = arith.subf %162, %150 : vector<8x1xf32>
      %164 = arith.divf %163, %162 : vector<8x1xf32>
      %165 = arith.subf %151, %164 : vector<8x1xf32>
      %cst_53 = arith.constant 1.000000e+00 : f32
      %166 = vector.broadcast %cst_53 : f32 to vector<8x1xf32>
      %167 = arith.subf %166, %165 : vector<8x1xf32>
      %cst_54 = arith.constant 0.000000e+00 : f32
      %168 = vector.broadcast %cst_54 : f32 to vector<8x1xf32>
      %169 = arith.select %34, %167, %168 : vector<8x1xi1>, vector<8x1xf32>
      %170 = vector.shape_cast %169 : vector<8x1xf32> to vector<1x8x1xf32>
      %cst_55 = arith.constant dense<0.000000e+00> : vector<1xf32>
      %171 = vector.multi_reduction <add>, %170, %cst_55 [1, 2] : vector<1x8x1xf32> to vector<1xf32>
      %172 = vector.shape_cast %171 : vector<1xf32> to vector<1x1x1xf32>
      %173 = vector.extract %172[0, 0, 0] : f32 from vector<1x1x1xf32>
      %c1_56 = arith.constant 1 : index
      %174 = memref.load %arg2[%c1_56] : memref<2xf32, #tpu.memory_space<smem>>
      %175 = arith.divf %173, %174 : f32
      %c2 = arith.constant 2 : index
      %176 = memref.load %arg6[%c2] : memref<3xf32, #tpu.memory_space<smem>>
      memref.store %175, %arg6[%c2] : memref<3xf32, #tpu.memory_space<smem>>
    } else {
    }
    return
  }
  func.func @transform_0(%arg0: i32, %arg1: memref<8xi32, #tpu.memory_space<smem>>) -> i32 {
    %c0_i32 = arith.constant 0 : i32
    %c0_i32_0 = arith.constant 0 : i32
    return %c0_i32 : i32
  }
  func.func @transform_1(%arg0: i32, %arg1: memref<8xi32, #tpu.memory_space<smem>>) -> (i32, i32) {
    %c0_i32 = arith.constant 0 : i32
    %c0_i32_0 = arith.constant 0 : i32
    return %arg0, %c0_i32 : i32, i32
  }
  func.func @transform_3(%arg0: i32, %arg1: memref<8xi32, #tpu.memory_space<smem>>) -> (i32, i32) {
    %c0_i32 = arith.constant 0 : i32
    %c0_i32_0 = arith.constant 0 : i32
    %c0_i32_1 = arith.constant 0 : i32
    return %c0_i32, %c0_i32_0 : i32, i32
  }
  func.func @transform_4(%arg0: i32, %arg1: memref<8xi32, #tpu.memory_space<smem>>) -> i32 {
    %c0_i32 = arith.constant 0 : i32
    %c0_i32_0 = arith.constant 0 : i32
    return %c0_i32 : i32
  }
}

</mosaic_0001>

<bundles_post_ra>
// kernel: tpu_custom_call.1
= control target key start
LH: loop header
LB: loop body
LE: loop exit
PB: predicated region body
PF: predicated region fallthrough
CT: control target
= control target key end

     0   :  { %s534_s0 = inlined_call_operand.vmem [shape: s32[8], index: 0, kind: input, shape index: {}]   ;;  %s535_s1 = inlined_call_operand.vmem [shape: f32[2], index: 1, kind: input, shape index: {}]   ;;  %s536_s2 = inlined_call_operand.vmem [shape: f32[8,128], index: 2, kind: input, shape index: {}]   ;;  %s537_s3 = inlined_call_operand.vmem [shape: f32[16,8], index: 3, kind: input, shape index: {}]   ;;  %s538_s4 = inlined_call_operand.vmem [shape: f32[8,4], index: 4, kind: input, shape index: {}]   ;;  %s539_s5 = inlined_call_operand.hbm [shape: f32[3], index: 5, kind: output, shape index: {}]  }
   0x1   :  { %s10_s20 = sshll.u32 %s534_s0, 4  ;;  %s11_s20 = int_to_ptr.vmem [resolvable:$true] %s10_s20 }
   0x2   :  { %s404_s21 = scalar_lea.vmem %s11_s20, 16  ;;  %p409_p1 = scmp.lt.s32.totalorder %s11_s20, %s11_s20 }
   0x3   :  { %p405_p0 = scmp.ne.s32.totalorder %s11_s20, %s404_s21  ;;  %p410_p2 = scmp.lt.s32.totalorder %s404_s21, %s404_s21 }
   0x5   :  { %p411_p3 = por %p410_p2, %p409_p1 }
   0x7   :  { %p412_p4 = pnand %p411_p3, %p405_p0 }
   0x9   :  { %415 = shalt.err (!%p412_p4)  }
   0xa   :  { %s460_s22 = smov [#allocation6]  }
   0xb   :  { %13 = dma.vmem_to_smem %s11_s20, 16, %s460_s22, [#allocation5] }
   0xc   :  { %444 = dma.done.wait [#allocation5], 16 }
   0xd   :  { %445 = vsyncadd [#allocation5], 4294967280 }
   0xe   :  { %15 = sfence }
   0xf   :  { %16 = vsyncpa [#allocation9], 0 }
  0x10   :  { %17 = vsyncpa [#allocation8], 0  ;;  %s24_s25 = sshll.u32 %s535_s1, 4  ;;  %s25_s25 = int_to_ptr.vmem [resolvable:$true] %s24_s25 }
  0x11   :  { %s416_s0 = scalar_lea.vmem %s25_s25, 16  ;;  %p421_p6 = scmp.lt.s32.totalorder %s25_s25, %s25_s25 }
  0x12   :  { %p417_p5 = scmp.ne.s32.totalorder %s25_s25, %s416_s0  ;;  %p422_p7 = scmp.lt.s32.totalorder %s416_s0, %s416_s0 }
  0x14   :  { %p423_p8 = por %p422_p7, %p421_p6 }
  0x16   :  { %p424_p9 = pnand %p423_p8, %p417_p5 }
  0x18   :  { %427 = shalt.err (!%p424_p9)
}
  0x19   :  { %s461_s26 = smov [#allocation7]  }
  0x1a   :  { %27 = dma.vmem_to_smem %s25_s25, 16, %s461_s26, [#allocation9]  }
  0x1b   :  { %446 = dma.done.wait [#allocation9], 16  }
  0x1c   :  { %447 = vsyncadd [#allocation9], 4294967280 }
  0x1d   :  { %35 = sfence }
  0x1e   :  { %v462_v0 = vmov 0.0   ;;  %s452_s27 = smov 0  }
  0x1f   :  { %40 = vst [vmem:[#allocation2] sm:$0xff] %v462_v0 }
  0x20 LB: > { %s47_s1 = sld [smem:[#allocation6 + %s454_s27]]  ;;  %s49_s6 = scalar_lea.vmem [#allocation3], %s454_s27  ;;  %s454_s27 = sphi %s452_s27, %s46_s27  }
  0x26   : > { %s48_s30 = scalar_lea.vmem %s537_s3, %s47_s1 }
  0x27   : > { %v68_v1 = vld [vmem:[%s48_s30] sm:$0x1] }
  0x28   : > { %69 = vst [vmem:[%s49_s6] sm:$0x1] %v68_v1 }
  0x29   : > { %95 = vsyncadd [#allocation4], 16  ;;  %s46_s27 = sadd.s32 1, %s454_s27  }
  0x2a   : > { %p43_p10 = scmp.ge.s32.totalorder %s46_s27, 5  }
  0x2b   :  { %v96_v2 = vld [vmem:[%s536_s2] sm:$0xff] (%p43_p10)  ;;  %s456_s2 = smov (%p43_p10), 0  }
  0x2c   :  { %45 = sbr.rel (!%p43_p10) target bundleno = 32 (0x20), region = 103  ;;  %v97_v3 = vand.u32 (%p43_p10), 2147483647, %v96_v2  ;;  %v107_v14 = vmax.f32 (%p43_p10), %v96_v2, 0.0  ;;  %vm104_vm1 = vcmp.ge.f32.partialorder (%p43_p10), %v96_v2, 0.0  ;;  %v118_v22 = vld [vmem:[#allocation2] sm:$0xff] (%p43_p10) }
  0x2e   :  { %v98_v4 = vsub.f32 (%p43_p10), 0.0, %v97_v3 }
  0x30   :  { %v99_v5 = vmul.f32 (%p43_p10), 1.442695, %v98_v4 }
  0x32   :  { %384 = vpow2.f32 %v99_v5 }
  0x3f   :  { %v385_v6 = vpop.eup %384 }
  0x40   :  { %v101_v7 = vadd.f32 1.0, %v385_v6  ;;  %v111_v8 = vmul.f32 -0.5, %v385_v6  ;;  %v114_v10 = vand.u32 2147483647, %v385_v6 }
  0x42   :  { %386 = vrcp.f32 %v101_v7  ;;  %v112_v9 = vadd.f32 1.0, %v111_v8  ;;  %vm115_vm0 = vcmp.lt.f32.partialorder %v114_v10, 0.0004427343 }
  0x43   :  { %388 = vlog2.f32 %v101_v7 }
  0x44   :  { %v113_v12 = vmul.f32 %v385_v6, %v112_v9 }
  0x4f   :  { %v387_v11 = vpop.eup %386 }
  0x50   :  { %v389_v13 = vpop.eup %388  ;;  %v105_v15 = vmul.f32 %v387_v11, %v385_v6 }
  0x51   :  { %v110_v16 = vmul.f32 0.6931472, %v389_v13 }
  0x52   :  { %v106_v19 = vsel %vm104_vm1, %v387_v11, %v105_v15 }
  0x53   :  { %v116_v17 = vsel %vm115_vm0, %v113_v12, %v110_v16 }
  0x54   :  { %v117_v18 = vadd.f32 %v116_v17, %v107_v14 }
  0x56   :  { %v119_v20 = vmul.f32 0.75, %v117_v18 }
  0x58   :  { %v120_v21 = vmul.f32 %v119_v20, %v106_v19 }
  0x5a   :  { %v121_v23 = vmul.f32 %v120_v21, %v106_v19 }
  0x5c   :  { %v122_v24 = vadd.f32 %v121_v23, %v118_v22 }
  0x5e   :  { %123 = vst [vmem:[#allocation2] sm:$0xff] %v122_v24 }
  0x5f LB: > { %448 = dma.done.wait [#allocation4], 16  ;;  %s458_s2 = sphi %s456_s2, %s132_s2  }
  0x60   : > { %449 = vsyncadd [#allocation4], 4294967280  ;;  %s132_s2 = sadd.s32 1, %s458_s2  }
  0x61   : > { %p129_p11 = scmp.ge.s32.totalorder %s132_s2, 5  }
  0x62   :  { %v509_v25 = vld [vmem:[#allocation3] sm:$0xff] (%p129_p11)  ;;  %v514_v26 = vld [vmem:[%s538_s4] sm:$0xff] (%p129_p11)  ;;  %s463_s10 = smov (%p129_p11), 126   ;;  %v137_v59 = vlaneseq (%p129_p11)  ;;  %s464_s4 = smov (%p129_p11), 127   ;;  %vm209_vm5 = vcmask (%p129_p11), 31744   ;;  %vm187_vm6 = vcmask (%p129_p11), 7168  }
  0x63   :  { %131 = sbr.rel (!%p129_p11) target bundleno = 95 (0x5f), region = 114  ;;  %v231_v27 = vmul.f32 (%p129_p11), 0.5, %v509_v25  ;;  %v238_v28 = vmul.f32 (%p129_p11), 0.5, %v514_v26  ;;  %v140_v29 = vand.u32 (%p129_p11), 2147483647, %v509_v25  ;;  %v159_v38 = vsub.f32 (%p129_p11), 0.0, %v509_v25 }
  0x64   :  { %v166_v43 = vmax.f32 (%p129_p11), %v509_v25, 0.0  ;;  %vm147_vm3 = vcmp.ge.f32.partialorder (%p129_p11), %v509_v25, 0.0  ;;  %v138_v5 = vshrl.u32 (%p129_p11), %v137_v59, 7  ;;  %s465_s11 = smov (%p129_p11), 124   ;;  %v207_v12 = vsub.f32 (%p129_p11), %v509_v25, %v514_v26  ;;  %s199_s12 = sld [smem:[#allocation7]] (%p129_p11) }
  0x65   :  { %233 = vrot.lane.b32.xlu0 (%p129_p11), %v231_v27, %s463_s10  ;;  %v141_v30 = vsub.f32 (%p129_p11), 0.0, %v140_v29  ;;  %v160_v42 = vmax.f32 (%p129_p11), %v159_v38, 0.0  ;;  %v173_v15 = vld [vmem:[#allocation2] sm:$0xff] (%p129_p11)  ;;  %s344_s13 = sld [smem:[#allocation7 + $0x1]] (%p129_p11)  ;;  %s466_s25 = smov (%p129_p11), [#allocation10]  }
  0x66   :  { %vm139_vm4 = vcmp.lt.s32.totalorder (%p129_p11), %v138_v5, 5  ;;  %v208_v13 = vand.u32 (%p129_p11), 2147483647, %v207_v12 }
  0x67   :  { %v142_v31 = vmul.f32 (%p129_p11), 1.442695, %v141_v30 }
  0x68   :  { %v210_v14 = vsel %vm209_vm5, %v208_v13, 0.0 }
  0x69   :  { %240 = vrot.lane.b32.xlu0 %v238_v28, %s463_s10  ;;  %390 = vpow2.f32 %v142_v31 }
  0x76   :  { %v391_v32 = vpop.eup %390 }
  0x77   :  { %v144_v33 = vadd.f32 1.0, %v391_v32  ;;  %v153_v34 = vmul.f32 -0.5, %v391_v32  ;;  %v156_v37 = vand.u32 2147483647, %v391_v32 }
  0x79   :  { %392 = vlog2.f32 %v144_v33  ;;  %v154_v35 = vadd.f32 1.0, %v153_v34  ;;  %vm157_vm2 = vcmp.lt.f32.partialorder %v156_v37, 0.0004427343 }
  0x7a   :  { %394 = vrcp.f32 %v144_v33 }
  0x7b   :  { %v155_v40 = vmul.f32 %v391_v32, %v154_v35 }
  0x86   :  { %v393_v36 = vpop.eup %392 }
  0x87   :  { %v152_v39 = vmul.f32 0.6931472, %v393_v36  ;;  %v395_v41 = vpop.eup %394 }
  0x88   :  { %v148_v44 = vmul.f32 %v395_v41, %v391_v32 }
  0x89   :  { %v158_v45 = vsel %vm157_vm2, %v155_v40, %v152_v39 }
  0x8a   :  { %v161_v46 = vadd.f32 %v160_v42, %v158_v45  ;;  %v167_v47 = vadd.f32 %v166_v43, %v158_v45  ;;  %v149_v48 = vsel %vm147_vm3, %v395_v41, %v148_v44 }
  0x8b   :  { %v163_v50 = vsub.f32 1.0, %v149_v48 }
  0x8c   :  { %v162_v49 = vmul.f32 0.25, %v161_v46  ;;  %v168_v51 = vmul.f32 0.75, %v167_v47  ;;  %v200_v47 = vstv %s199_s12 }
  0x8e   :  { %v164_v55 = vmul.f32 %v163_v50, %v162_v49  ;;  %v169_v56 = vmul.f32 %v168_v51, %v149_v48 }
  0x90   :  { %v165_v62 = vmul.f32 %v164_v55, %v163_v50  ;;  %v170_v63 = vmul.f32 %v169_v56, %v149_v48  ;;  %v225_v50 = vstv %s344_s13 }
  0x92   :  { %v171_v10 = vsub.f32 %v165_v62, %v170_v63 }
  0x94   :  { %v172_v11 = vsel %vm139_vm4, %v171_v10, 0.0 }
  0xd7   :  { %v234_v52 = vpop.permute.xlu0 %233 }
  0xd8   :  { %v236_v53 = vsub.f32 %v509_v25, %v234_v52  ;;  %v237_v54 = vadd.f32 %v234_v52, %v509_v25 }
  0xda   :  { %v245_v57 = vsub.f32 %v237_v54, %v236_v53 }
  0xdb   :  { %v241_v58 = vpop.permute.xlu0 %240 }
  0xdc   :  { %v243_v60 = vsub.f32 %v514_v26, %v241_v58  ;;  %v244_v61 = vadd.f32 %v241_v58, %v514_v26  ;;  %247 = vrot.lane.b32.xlu1 %v245_v57, %s464_s4 }
  0xde   :  { %v257_v0 = vmin.f32 %v237_v54, %v244_v61  ;;  %v258_v1 = vmax.f32 %v236_v53, %v243_v60  ;;  %v270_v2 = vmax.f32 %v237_v54, %v244_v61  ;;  %v271_v3 = vmin.f32 %v236_v53, %v243_v60 }
  0xdf   :  { %v251_v4 = vsub.f32 %v244_v61, %v243_v60 }
  0xe0   :  { %v259_v6 = vsub.f32 %v257_v0, %v258_v1  ;;  %v272_v7 = vsub.f32 %v270_v2, %v271_v3 }
  0xe1   :  { %253 = vrot.lane.b32.xlu1 %v251_v4, %s464_s4 }
  0xe2   :  { %v260_v8 = vmax.f32 %v259_v6, 0.0  ;;  %v273_v9 = vmax.f32 %v272_v7, 0.0 }
  0xe4   :  { %262 = vrot.lane.b32.xlu0 %v260_v8, %s464_s4 }
  0xe5   :  { %275 = vrot.lane.b32.xlu1 %v273_v9, %s464_s4 }
  0xe9   :  { %184 = vrot.lane.b32.xlu1 %v172_v11, %s465_s11 }
 0x103   :  { %211 = vadd.xlane.f32.xlu0 %v210_v14 }
 0x10d   :  { %174 = vadd.xlane.f32.xlu1 %v173_v15 }
 0x14e   :  { %v248_v16 = vpop.permute.xlu1 %247 }
 0x14f   :  { %v250_v20 = vmul.f32 %v248_v16, %v245_v57 }
 0x153   :  { %v254_v17 = vpop.permute.xlu1 %253 }
 0x154   :  { %v256_v19 = vmul.f32 %v254_v17, %v251_v4 }
 0x156   :  { %v263_v18 = vpop.permute.xlu0 %262  ;;  %v266_v22 = vadd.f32 %v256_v19, %v250_v20 }
 0x157   :  { %v265_v21 = vmul.f32 %v263_v18, %v260_v8  ;;  %v276_v23 = vpop.permute.xlu1 %275 }
 0x158   :  { %v278_v27 = vmul.f32 %v276_v23, %v273_v9 }
 0x159   :  { %v267_v24 = vsub.f32 %v266_v22, %v265_v21 }
 0x15b   :  { %396 = vrcp.f32 %v267_v24  ;;  %v279_v29 = vsub.f32 %v278_v27, %v267_v24  ;;  %v185_v34 = vpop.permute.xlu1 %184 }
 0x15c   :  { %398 = vrcp.f32 %v278_v27  ;;  %v188_v37 = vsel %vm187_vm6, %v185_v34, 0.0 }
 0x15d   :  { %400 = vrcp.f32 %v200_v47 }
 0x15e   :  { %402 = vrcp.f32 %v225_v50 }
 0x168   :  { %v397_v28 = vpop.eup %396 }
 0x169   :  { %v399_v25 = vpop.eup %398  ;;  %v269_v26 = vmul.f32 %v397_v28, %v265_v21 }
 0x16a   :  { %v281_v30 = vmul.f32 %v399_v25, %v279_v29  ;;  %v401_v1 = vpop.eup %400 }
 0x16b   :  { %v403_v4 = vpop.eup %402 }
 0x16c   :  { %v282_v31 = vsub.f32 %v269_v26, %v281_v30 }
 0x16e   :  { %v283_v36 = vsub.f32 1.0, %v282_v31 }
 0x170   :  { %v284_v38 = vsel %vm139_vm4, %v283_v36, 0.0 }
 0x171   :  { %v285_v39 = vsel %vm187_vm6, %v284_v38, 0.0 }
 0x18c   :  { %v212_v32 = vpop.xlane.xlu0 %211 }
 0x18d   :  { %v213_v33 = vsel %vm139_vm4, %v212_v32, 0.0 }
 0x18e   :  { %v214_v35 = vsel %vm187_vm6, %v213_v33, 0.0 }
 0x18f   :  { %215 = vadd.xlane.f32.xlu0 %v214_v35 }
 0x193   :  { %189 = vadd.xlane.f32.xlu0 %v188_v37 }
 0x196   :  { %v175_v40 = vpop.xlane.xlu1 %174 }
 0x197   :  { %286 = vadd.xlane.f32.xlu0 %v285_v39  ;;  %v176_v41 = vrot.slane %v175_v40, 4 }
 0x199   :  { %v177_v42 = vadd.f32 %v176_v41, %v175_v40 }
 0x19b   :  { %v178_v43 = vrot.slane %v177_v42, 2 }
 0x19d   :  { %v179_v44 = vadd.f32 %v178_v43, %v177_v42 }
 0x19f   :  { %v180_v45 = vrot.slane %v179_v44, 1 }
 0x1a1   :  { %v181_v46 = vadd.f32 %v180_v45, %v179_v44 }
 0x1a3   :  { %347 = vpush %v181_v46 }
 0x1d4   :  { %s348_s14 = spop %347 }
 0x218   :  { %v216_v48 = vpop.xlane.xlu0 %215 }
 0x219   :  { %v217_v49 = vrot.slane %v216_v48, 4 }
 0x21b   :  { %v218_v51 = vadd.f32 %v217_v49, %v216_v48 }
 0x21c   :  { %v190_v52 = vpop.xlane.xlu0 %189 }
 0x21d   :  { %v219_v53 = vrot.slane %v218_v51, 2  ;;  %v191_v54 = vrot.slane %v190_v52, 4 }
 0x21f   :  { %v192_v55 = vadd.f32 %v191_v54, %v190_v52  ;;  %v220_v59 = vadd.f32 %v219_v53, %v218_v51 }
 0x220   :  { %v287_v56 = vpop.xlane.xlu0 %286 }
 0x221   :  { %v193_v57 = vrot.slane %v192_v55, 2  ;;  %v288_v58 = vrot.slane %v287_v56, 4  ;;  %v221_v0 = vrot.slane %v220_v59, 1 }
 0x223   :  { %v289_v60 = vadd.f32 %v288_v58, %v287_v56  ;;  %v194_v61 = vadd.f32 %v193_v57, %v192_v55  ;;  %v222_v5 = vadd.f32 %v221_v0, %v220_v59 }
 0x225   :  { %v290_v62 = vrot.slane %v289_v60, 2  ;;  %v195_v63 = vrot.slane %v194_v61, 1 }
 0x227   :  { %v291_v2 = vadd.f32 %v290_v62, %v289_v60  ;;  %v196_v3 = vadd.f32 %v195_v63, %v194_v61 }
 0x229   :  { %349 = vpush %v196_v3  ;;  %v292_v6 = vrot.slane %v291_v2, 1 }
 0x22a   :  { %351 = vpush %v401_v1 }
 0x22b   :  { %353 = vpush %v222_v5  ;;  %v293_v7 = vadd.f32 %v292_v6, %v291_v2 }
 0x22c   :  { %355 = vpush %v403_v4 }
 0x22d   :  { %357 = vpush %v293_v7 }
 0x22e   :  { %359 = vpush %v403_v4 }
 0x25a   :  { %s350_s15 = spop %349 }
 0x25b   :  { %s198_s16 = sadd.f32 %s350_s15, %s348_s14  ;;  %s352_s17 = spop %351 }
 0x25c   :  { %s354_s18 = spop %353 }
 0x25d   :  { %s203_s19 = smul.f32 %s352_s17, %s198_s16  ;;  %s356_s20 = spop %355 }
 0x25e   :  { %s228_s21 = smul.f32 %s356_s20, %s354_s18  ;;  %s358_s22 = spop %357 }
 0x25f   :  { %205 = sst [smem:[#allocation10]] %s203_s19  ;;  %s360_s23 = spop %359 }
 0x260   :  { %230 = sst [smem:[#allocation10 + $0x1]] %s228_s21  ;;  %s299_s24 = smul.f32 %s360_s23, %s358_s22 }
 0x262   :  { %301 = sst [smem:[#allocation10 + $0x2]] %s299_s24 }
 0x263   :  { %309 = dma.smem_to_hbm %s466_s25, 16, %s539_s5, [#allocation8]  }
 0x264   :  { %450 = dma.done.wait [#allocation8], 16  }
 0x265   :  { %451 = vsyncadd [#allocation8], 4294967280 }
 0x266   :  { %313 = sfence }
 0x267   :  { %314 = vsyncpa [#allocation8], 1 }
 0x268   :  { %315 = vsyncpa [#allocation9], 1 }
 0x269   :  { %316 = vsyncmov [#allocation4] }
 0x26c   :  { %s317_s27 = vpop.sfrf %316 }
 0x26d   :  { %p346_p12 = scmp.ne.s32.totalorder %s317_s27, 0 }
 0x26f   :  { %321 = shalt.err (%p346_p12)  }

</bundles_post_ra>
